<compile_context>
chip_gen: v7x
topology: tpu7x:2x2x1
jax: 0.10.0
libtpu: 0.0.40
codegen_flags: <defaults>
</compile_context>

<pallas_src>
import jax
import jax.numpy as jnp
from jax.experimental import pallas as pl
from jax.experimental.pallas import tpu as pltpu


def mlp_kernel(params_ref, x_ref, o_ref):
    """params_ref: SMEM f32[17] = [w1 (2*4 row-major), b1 (4), w2 (4), b2 (1)]
    x_ref: VMEM (2, TB)  -- batch on lanes
    o_ref: VMEM (1, TB)
    """
    x0 = x_ref[0:1, :]  # (1, TB)
    x1 = x_ref[1:2, :]  # (1, TB)

    # fc1 + ReLU + fc2 accumulation, fully unrolled over the 4 hidden units.
    z = None
    for j in range(4):
        hj = x0 * params_ref[0 * 4 + j] + x1 * params_ref[1 * 4 + j] + params_ref[8 + j]
        hj = jnp.maximum(hj, 0.0)                      # torch.relu
        cj = hj * params_ref[12 + j]                   # fc2 weight contribution
        z = cj if z is None else z + cj
    z = z + params_ref[16]                             # fc2 bias

    # sigmoid(z) = 1 / (1 + exp(-z)); exp and approx-reciprocal both go to the EUP.
    o_ref[...] = pl.reciprocal(1.0 + jnp.exp(-z), approx=True)


def simple_nn_forward(x, w1, b1, w2, b2, *, tb=256 * 1024):
    """x: (B, 2) f32; w1: (2, 4); b1: (1, 4); w2: (4, 1); b2: (1, 1) -> (B, 1) f32."""
    B = x.shape[0]

    # Flatten the 17 parameters into one SMEM-resident vector.
    params = jnp.concatenate(
        [w1.reshape(-1), b1.reshape(-1), w2.reshape(-1), b2.reshape(-1)]
    ).astype(jnp.float32)

    # Batch tile on the lane axis: multiple of 128, capped by `tb` for VMEM safety
    # (2 + 1 rows of f32, double-buffered => 24 * TB bytes; 256K -> ~6.3 MiB).
    tile_b = min(tb, pl.cdiv(B, 128) * 128)
    b_pad = pl.cdiv(B, tile_b) * tile_b

    # Layout plumbing: transpose so batch is lane-dense, zero-pad to the tile.
    xt = jnp.zeros((2, b_pad), jnp.float32).at[:, :B].set(x.astype(jnp.float32).T)

    out = pl.pallas_call(
        mlp_kernel,
        out_shape=jax.ShapeDtypeStruct((1, b_pad), jnp.float32),
        grid=(b_pad // tile_b,),
        in_specs=[
            pl.BlockSpec(memory_space=pltpu.MemorySpace.SMEM),   # params (17,)
            pl.BlockSpec((2, tile_b), lambda i: (0, i)),         # x tile
        ],
        out_specs=pl.BlockSpec((1, tile_b), lambda i: (0, i)),
        compiler_params=pltpu.CompilerParams(
            dimension_semantics=("parallel",),   # v7x: shard batch across 2 TCs
        ),
        cost_estimate=pl.CostEstimate(
            flops=32 * b_pad,
            transcendentals=b_pad,
            bytes_accessed=12 * b_pad + params.size * 4,
        ),
    )(params, xt)

    return out[0, :B].reshape(B, 1)


def init_params(key):
    """Deterministic init matching PyTorch nn.Linear default
    (uniform in +-1/sqrt(fan_in)) for fc1: Linear(2,4), fc2: Linear(4,1)."""
    k1, k2, k3, k4 = jax.random.split(key, 4)
    bound1 = 1.0 / jnp.sqrt(2.0)
    bound2 = 1.0 / jnp.sqrt(4.0)
    # stored as (in, out) so the forward computes x @ W + b
    w1 = jax.random.uniform(k1, (2, 4), jnp.float32, -bound1, bound1)
    b1 = jax.random.uniform(k2, (1, 4), jnp.float32, -bound1, bound1)
    w2 = jax.random.uniform(k3, (4, 1), jnp.float32, -bound2, bound2)
    b2 = jax.random.uniform(k4, (1, 1), jnp.float32, -bound2, bound2)
    return w1, b1, w2, b2


if __name__ == "__main__":
    key = jax.random.PRNGKey(0)
    key_x, key_p = jax.random.split(key)

    batch = 8
    x = jax.random.normal(key_x, (batch, 2), dtype=jnp.float32)
    w1, b1, w2, b2 = init_params(key_p)

    out = simple_nn_forward(x, w1, b1, w2, b2)
    out = jax.block_until_ready(out)

    # sanity check against a pure-JAX reference of the same forward pass
    ref = jax.nn.sigmoid(jnp.maximum(x @ w1 + b1, 0.0) @ w2 + b2)
    assert out.shape == (batch, 1)
    # loose atol accounts for the EUP approx-reciprocal in the in-kernel sigmoid
    assert jnp.allclose(out, ref, atol=2e-3), "mismatch vs reference"

    print("KERNEL_OK")
</pallas_src>

<mosaic_0001>
module attributes {stable_mosaic.version = 11 : i64} {
  func.func @mlp_kernel(%arg0: i32, %arg1: memref<17xf32, #tpu.memory_space<smem>>, %arg2: memref<2x128xf32, #tpu.memory_space<vmem>>, %arg3: memref<1x128xf32, #tpu.memory_space<vmem>>) attributes {dimension_semantics = [#tpu.dimension_semantics<parallel>], iteration_bounds = array<i64: 1>, scalar_prefetch = 0 : i64, scratch_operands = 0 : i64, tpu.core_type = #tpu.core_type<tc>, window_params = [{transform_indices = @transform_0, window_bounds = array<i64: 17>}, {transform_indices = @transform_1, window_bounds = array<i64: 2, 128>}, {transform_indices = @transform_2, window_bounds = array<i64: 1, 128>}]} {
    %c0 = arith.constant 0 : index
    %c0_0 = arith.constant 0 : index
    %0 = vector.load %arg2[%c0, %c0_0] : memref<2x128xf32, #tpu.memory_space<vmem>>, vector<1x128xf32>
    %c1 = arith.constant 1 : index
    %c0_1 = arith.constant 0 : index
    %1 = vector.load %arg2[%c1, %c0_1] : memref<2x128xf32, #tpu.memory_space<vmem>>, vector<1x128xf32>
    %c0_2 = arith.constant 0 : index
    %2 = memref.load %arg1[%c0_2] : memref<17xf32, #tpu.memory_space<smem>>
    %3 = vector.broadcast %2 : f32 to vector<1x128xf32>
    %4 = arith.mulf %0, %3 : vector<1x128xf32>
    %c4 = arith.constant 4 : index
    %5 = memref.load %arg1[%c4] : memref<17xf32, #tpu.memory_space<smem>>
    %6 = vector.broadcast %5 : f32 to vector<1x128xf32>
    %7 = arith.mulf %1, %6 : vector<1x128xf32>
    %8 = arith.addf %4, %7 : vector<1x128xf32>
    %c8 = arith.constant 8 : index
    %9 = memref.load %arg1[%c8] : memref<17xf32, #tpu.memory_space<smem>>
    %10 = vector.broadcast %9 : f32 to vector<1x128xf32>
    %11 = arith.addf %8, %10 : vector<1x128xf32>
    %cst = arith.constant 0.000000e+00 : f32
    %12 = vector.broadcast %cst : f32 to vector<1x128xf32>
    %13 = arith.maximumf %11, %12 : vector<1x128xf32>
    %c12 = arith.constant 12 : index
    %14 = memref.load %arg1[%c12] : memref<17xf32, #tpu.memory_space<smem>>
    %15 = vector.broadcast %14 : f32 to vector<1x128xf32>
    %16 = arith.mulf %13, %15 : vector<1x128xf32>
    %c1_3 = arith.constant 1 : index
    %17 = memref.load %arg1[%c1_3] : memref<17xf32, #tpu.memory_space<smem>>
    %18 = vector.broadcast %17 : f32 to vector<1x128xf32>
    %19 = arith.mulf %0, %18 : vector<1x128xf32>
    %c5 = arith.constant 5 : index
    %20 = memref.load %arg1[%c5] : memref<17xf32, #tpu.memory_space<smem>>
    %21 = vector.broadcast %20 : f32 to vector<1x128xf32>
    %22 = arith.mulf %1, %21 : vector<1x128xf32>
    %23 = arith.addf %19, %22 : vector<1x128xf32>
    %c9 = arith.constant 9 : index
    %24 = memref.load %arg1[%c9] : memref<17xf32, #tpu.memory_space<smem>>
    %25 = vector.broadcast %24 : f32 to vector<1x128xf32>
    %26 = arith.addf %23, %25 : vector<1x128xf32>
    %cst_4 = arith.constant 0.000000e+00 : f32
    %27 = vector.broadcast %cst_4 : f32 to vector<1x128xf32>
    %28 = arith.maximumf %26, %27 : vector<1x128xf32>
    %c13 = arith.constant 13 : index
    %29 = memref.load %arg1[%c13] : memref<17xf32, #tpu.memory_space<smem>>
    %30 = vector.broadcast %29 : f32 to vector<1x128xf32>
    %31 = arith.mulf %28, %30 : vector<1x128xf32>
    %32 = arith.addf %16, %31 : vector<1x128xf32>
    %c2 = arith.constant 2 : index
    %33 = memref.load %arg1[%c2] : memref<17xf32, #tpu.memory_space<smem>>
    %34 = vector.broadcast %33 : f32 to vector<1x128xf32>
    %35 = arith.mulf %0, %34 : vector<1x128xf32>
    %c6 = arith.constant 6 : index
    %36 = memref.load %arg1[%c6] : memref<17xf32, #tpu.memory_space<smem>>
    %37 = vector.broadcast %36 : f32 to vector<1x128xf32>
    %38 = arith.mulf %1, %37 : vector<1x128xf32>
    %39 = arith.addf %35, %38 : vector<1x128xf32>
    %c10 = arith.constant 10 : index
    %40 = memref.load %arg1[%c10] : memref<17xf32, #tpu.memory_space<smem>>
    %41 = vector.broadcast %40 : f32 to vector<1x128xf32>
    %42 = arith.addf %39, %41 : vector<1x128xf32>
    %cst_5 = arith.constant 0.000000e+00 : f32
    %43 = vector.broadcast %cst_5 : f32 to vector<1x128xf32>
    %44 = arith.maximumf %42, %43 : vector<1x128xf32>
    %c14 = arith.constant 14 : index
    %45 = memref.load %arg1[%c14] : memref<17xf32, #tpu.memory_space<smem>>
    %46 = vector.broadcast %45 : f32 to vector<1x128xf32>
    %47 = arith.mulf %44, %46 : vector<1x128xf32>
    %48 = arith.addf %32, %47 : vector<1x128xf32>
    %c3 = arith.constant 3 : index
    %49 = memref.load %arg1[%c3] : memref<17xf32, #tpu.memory_space<smem>>
    %50 = vector.broadcast %49 : f32 to vector<1x128xf32>
    %51 = arith.mulf %0, %50 : vector<1x128xf32>
    %c7 = arith.constant 7 : index
    %52 = memref.load %arg1[%c7] : memref<17xf32, #tpu.memory_space<smem>>
    %53 = vector.broadcast %52 : f32 to vector<1x128xf32>
    %54 = arith.mulf %1, %53 : vector<1x128xf32>
    %55 = arith.addf %51, %54 : vector<1x128xf32>
    %c11 = arith.constant 11 : index
    %56 = memref.load %arg1[%c11] : memref<17xf32, #tpu.memory_space<smem>>
    %57 = vector.broadcast %56 : f32 to vector<1x128xf32>
    %58 = arith.addf %55, %57 : vector<1x128xf32>
    %cst_6 = arith.constant 0.000000e+00 : f32
    %59 = vector.broadcast %cst_6 : f32 to vector<1x128xf32>
    %60 = arith.maximumf %58, %59 : vector<1x128xf32>
    %c15 = arith.constant 15 : index
    %61 = memref.load %arg1[%c15] : memref<17xf32, #tpu.memory_space<smem>>
    %62 = vector.broadcast %61 : f32 to vector<1x128xf32>
    %63 = arith.mulf %60, %62 : vector<1x128xf32>
    %64 = arith.addf %48, %63 : vector<1x128xf32>
    %c16 = arith.constant 16 : index
    %65 = memref.load %arg1[%c16] : memref<17xf32, #tpu.memory_space<smem>>
    %66 = vector.broadcast %65 : f32 to vector<1x128xf32>
    %67 = arith.addf %64, %66 : vector<1x128xf32>
    %cst_7 = arith.constant 0.000000e+00 : f32
    %68 = vector.broadcast %cst_7 : f32 to vector<1x128xf32>
    %69 = arith.subf %68, %67 : vector<1x128xf32>
    %70 = math.exp %69 : vector<1x128xf32>
    %cst_8 = arith.constant 1.000000e+00 : f32
    %71 = vector.broadcast %cst_8 : f32 to vector<1x128xf32>
    %72 = arith.addf %71, %70 : vector<1x128xf32>
    %73 = tpu.reciprocal %72 {approx = true} : vector<1x128xf32> -> vector<1x128xf32>
    %c0_9 = arith.constant 0 : index
    %c0_10 = arith.constant 0 : index
    %74 = vector.load %arg3[%c0_9, %c0_10] : memref<1x128xf32, #tpu.memory_space<vmem>>, vector<1x128xf32>
    tpu.vector_store %arg3[%c0_9, %c0_10], %73 {strides = array<i32>} : memref<1x128xf32, #tpu.memory_space<vmem>>, vector<1x128xf32>,
    return
  }
  func.func @transform_0(%arg0: i32) -> i32 {
    %c0_i32 = arith.constant 0 : i32
    %c0_i32_0 = arith.constant 0 : i32
    return %c0_i32 : i32
  }
  func.func @transform_1(%arg0: i32) -> (i32, i32) {
    %c0_i32 = arith.constant 0 : i32
    %c0_i32_0 = arith.constant 0 : i32
    return %c0_i32, %arg0 : i32, i32
  }
  func.func @transform_2(%arg0: i32) -> (i32, i32) {
    %c0_i32 = arith.constant 0 : i32
    %c0_i32_0 = arith.constant 0 : i32
    return %c0_i32, %arg0 : i32, i32
  }
}

</mosaic_0001>

<bundles_post_ra>
// kernel: tpu_custom_call.1
= control target key start
LH: loop header
LB: loop body
LE: loop exit
PB: predicated region body
PF: predicated region fallthrough
CT: control target
= control target key end

     0   :  { %7 = vsyncpa [#allocation4], 0  ;;  %s231_s0 = inlined_call_operand.hbm [shape: f32[17], index: 0, kind: input, shape index: {}]   ;;  %s232_s1 = inlined_call_operand.vmem [shape: f32[2,128], index: 1, kind: input, shape index: {}]   ;;  %s233_s2 = inlined_call_operand.hbm [shape: f32[1,128], index: 2, kind: output, shape index: {}]  }
   0x1   :  { %8 = vsyncpa [#allocation3], 0  ;;  %s130_s11 = scalar_lea.hbm %s231_s0, 16 }
   0x2   :  { %p131_p0 = scmp.ne.s32.totalorder %s231_s0, %s130_s11  ;;  %p134_p1 = scmp.lt.u32.totalorder %s130_s11, %s231_s0 }
   0x4   :  { %p136_p2 = pnand %p134_p1, %p131_p0 }
   0x6   :  { %139 = shalt.err (!%p136_p2)
}
   0x7   :  { %s166_s16 = smov [#allocation2]  }
   0x8   :  { %16 = dma.hbm_to_smem %s231_s0, 16, %s166_s16, [#allocation4]  }
   0x9   :  { %162 = dma.done.wait [#allocation4], 16  }
   0xa   :  { %163 = vsyncadd [#allocation4], 4294967280 }
   0xb   :  { %22 = sfence }
   0xc   :  { %s25_s19 = sld [smem:[#allocation2]]  ;;  %s108_s20 = sld [smem:[#allocation2 + $0x4]]  ;;  %v23_v0 = vld [vmem:[%s232_s1] sm:$0x1]  ;;  %v24_v1 = vld [vmem:[%s232_s1 + $0x1] sm:$0x1] }
   0xd   :  { %s109_s21 = sld [smem:[#allocation2 + $0x8]]  ;;  %s111_s22 = sld [smem:[#allocation2 + $0x1]] }
   0xe   :  { %s112_s23 = sld [smem:[#allocation2 + $0x5]]  ;;  %s195_s24 = sld [smem:[#allocation2 + $0x9]] }
   0xf   :  { %s200_s27 = sld [smem:[#allocation2 + $0xc]]  ;;  %s115_s28 = sld [smem:[#allocation2 + $0x2]] }
  0x10   :  { %s116_s0 = sld [smem:[#allocation2 + $0x6]]  ;;  %s205_s3 = sld [smem:[#allocation2 + $0xa]] }
  0x11   :  { %s119_s4 = sld [smem:[#allocation2 + $0x3]]  ;;  %s207_s5 = sld [smem:[#allocation2 + $0xd]] }
  0x12   :  { %v26_v2 = vstv %s25_s19  ;;  %v29_v4 = vstv %s108_s20  ;;  %s120_s6 = sld [smem:[#allocation2 + $0x7]]  ;;  %s209_s7 = sld [smem:[#allocation2 + $0xb]] }
  0x13   :  { %v27_v3 = vmul.f32 %v26_v2, %v23_v0  ;;  %v30_v5 = vmul.f32 %v29_v4, %v24_v1  ;;  %v40_v6 = vstv %s111_s22  ;;  %v33_v7 = vstv %s109_s21  ;;  %s211_s1 = sld [smem:[#allocation2 + $0xe]]  ;;  %s122_s8 = sld [smem:[#allocation2 + $0xf]] }
  0x14   :  { %v41_v8 = vmul.f32 %v40_v6, %v23_v0  ;;  %v43_v9 = vstv %s112_s23  ;;  %v47_v13 = vstv %s195_s24  ;;  %s123_s9 = sld [smem:[#allocation2 + $0x10]]  ;;  %s167_s10 = smov [#allocation5]  }
  0x15   :  { %v31_v10 = vadd.f32 %v30_v5, %v27_v3  ;;  %v44_v11 = vmul.f32 %v43_v9, %v24_v1  ;;  %v55_v12 = vstv %s115_s28  ;;  %v37_v19 = vstv %s200_s27  ;;  %s99_s11 = sshll.u32 %s167_s10, 4  ;;  %s100_s11 = int_to_ptr.vmem [resolvable:$true] %s99_s11 }
  0x16   :  { %v56_v14 = vmul.f32 %v55_v12, %v23_v0  ;;  %v58_v15 = vstv %s116_s0  ;;  %v62_v20 = vstv %s205_s3  ;;  %s140_s12 = scalar_lea.vmem %s100_s11, 16  ;;  %s144_s13 = scalar_lea.vmem %s100_s11, 32 }
  0x17   :  { %v34_v16 = vadd.f32 %v33_v7, %v31_v10  ;;  %v45_v17 = vadd.f32 %v44_v11, %v41_v8  ;;  %v59_v18 = vmul.f32 %v58_v15, %v24_v1  ;;  %v70_v21 = vstv %s119_s4  ;;  %p141_p3 = scmp.ne.s32.totalorder %s100_s11, %s140_s12  ;;  %p145_p4 = scmp.lt.s32.totalorder %s100_s11, %s100_s11 }
  0x18   :  { %v73_v22 = vstv %s120_s6  ;;  %v71_v26 = vmul.f32 %v70_v21, %v23_v0  ;;  %v51_v27 = vstv %s207_s5  ;;  %v77_v32 = vstv %s209_s7  ;;  %p146_p5 = scmp.lt.s32.totalorder %s144_s13, %s140_s12 }
  0x19   :  { %v35_v23 = vmax.f32 %v34_v16, 0.0  ;;  %v48_v24 = vadd.f32 %v47_v13, %v45_v17  ;;  %v60_v25 = vadd.f32 %v59_v18, %v56_v14  ;;  %v74_v28 = vmul.f32 %v73_v22, %v24_v1 }
  0x1a   :  { %v66_v33 = vstv %s211_s1  ;;  %v81_v40 = vstv %s122_s8  ;;  %v85_v44 = vstv %s123_s9  ;;  %p147_p6 = por %p146_p5, %p145_p4 }
  0x1b   :  { %v38_v29 = vmul.f32 %v37_v19, %v35_v23  ;;  %v49_v30 = vmax.f32 %v48_v24, 0.0  ;;  %v63_v31 = vadd.f32 %v62_v20, %v60_v25  ;;  %v75_v34 = vadd.f32 %v74_v28, %v71_v26 }
  0x1c   :  { %p148_p7 = pnand %p147_p6, %p141_p3 }
  0x1d   :  { %v52_v35 = vmul.f32 %v51_v27, %v49_v30  ;;  %v64_v36 = vmax.f32 %v63_v31, 0.0  ;;  %v78_v37 = vadd.f32 %v77_v32, %v75_v34 }
  0x1f   :  { %v53_v38 = vadd.f32 %v52_v35, %v38_v29  ;;  %v67_v39 = vmul.f32 %v66_v33, %v64_v36  ;;  %v79_v41 = vmax.f32 %v78_v37, 0.0 }
  0x21   :  { %v68_v42 = vadd.f32 %v67_v39, %v53_v38  ;;  %v82_v43 = vmul.f32 %v81_v40, %v79_v41 }
  0x23   :  { %v83_v45 = vadd.f32 %v82_v43, %v68_v42 }
  0x25   :  { %v86_v46 = vadd.f32 %v85_v44, %v83_v45 }
  0x27   :  { %v87_v47 = vsub.f32 0.0, %v86_v46 }
  0x29   :  { %v88_v48 = vmul.f32 1.442695, %v87_v47 }
  0x2b   :  { %126 = vpow2.f32 %v88_v48 }
  0x35   :  { %v127_v49 = vpop.eup %126 }
  0x36   :  { %v90_v50 = vadd.f32 1.0, %v127_v49 }
  0x38   :  { %128 = vrcp.f32 %v90_v50 }
  0x42   :  { %v129_v51 = vpop.eup %128 }
  0x43   :  { %92 = vst [vmem:[#allocation5] sm:$0x1] %v129_v51 }
  0x44   :  { %151 = shalt.err (!%p148_p7)
}
  0x45   :  { %s152_s16 = scalar_lea.hbm %s233_s2, 16 }
  0x46   :  { %p153_p8 = scmp.ne.s32.totalorder %s233_s2, %s152_s16  ;;  %p156_p9 = scmp.lt.u32.totalorder %s152_s16, %s233_s2 }
  0x48   :  { %p158_p10 = pnand %p156_p9, %p153_p8 }
  0x4a   :  { %161 = shalt.err (!%p158_p10)
}
  0x4b   :  { %102 = dma.vmem_to_hbm [thread:$0]  %s100_s11, 16, %s233_s2, [#allocation3]  }
  0x4c   :  { %164 = dma.done.wait [#allocation3], 16  }
  0x4d   :  { %165 = vsyncadd [#allocation3], 4294967280 }
  0x4e   :  { %106 = vsyncpa [#allocation3], 1 }
  0x4f   :  { %107 = vsyncpa [#allocation4], 1 }

</bundles_post_ra>
